<compile_context>
chip_gen: v7x
topology: tpu7x:2x2x1
jax: 0.10.0
libtpu: 0.0.40
codegen_flags: <defaults>
</compile_context>

<pallas_src>
import functools
import math

import jax
import jax.numpy as jnp
from jax.experimental import pallas as pl
from jax.experimental.pallas import tpu as pltpu

INF = 1e10  # module default self.inf


def _attn_kernel(q_ref, kt_ref, v_ref, *rest, clip, logit_mul, has_mask):
    """One grid step: all heads of one batch element, one block of q rows.

    q_ref : (H, Tq, D)   kt_ref: (H, D, Sk)   v_ref: (H, Sk, D)
    bias_ref (optional): (1, Sk) additive mask bias (0.0 or -INF)
    o_ref : (Tq, H*D) lane-dense output slab
    """
    if has_mask:
        bias_ref, o_ref = rest
    else:
        (o_ref,) = rest

    n_heads, tq, _ = q_ref.shape
    sk = kt_ref.shape[-1]

    if has_mask:
        # Hoist the broadcast out of the per-head loop (JAX does not CSE it).
        bias = pl.broadcast_to(bias_ref[...], (tq, sk))

    outs = []
    for h in range(n_heads):  # unrolled at trace time; H is small (e.g. 8)
        # Native dtype straight into the MXU; accumulate in f32.
        logits = jnp.dot(q_ref[h], kt_ref[h],
                         preferred_element_type=jnp.float32) * logit_mul
        if clip is not None:
            logits = clip * jnp.tanh(logits)
        if has_mask:
            logits = logits + bias
        m = jnp.max(logits, axis=-1, keepdims=True)
        p = jnp.exp(logits - m)
        inv = pl.reciprocal(jnp.sum(p, axis=-1, keepdims=True), approx=True)
        probs = (p * inv).astype(v_ref.dtype)
        outs.append(jnp.dot(probs, v_ref[h],
                            preferred_element_type=jnp.float32))

    # Concatenate the H per-head (Tq, D) tiles along lanes -> (Tq, H*D):
    # one full-width (unmasked) store instead of H masked 16-lane stores.
    o_ref[...] = jnp.concatenate(outs, axis=-1).astype(o_ref.dtype)


def _pick_q_block(sq):
    # Tile Sq for long sequences so the per-step f32 (Tq, Sk) logits stay
    # well inside VMEM (important on v7x's 64 MiB per-TC VMEM).
    for cand in (1024, 512, 256):
        if sq > cand and sq % cand == 0:
            return cand
    return sq


def dot_product_attention(q, k, v, mask=None, clip=None, head_depth=None):
    """Forward of DotProductAttention (return_logits=False path).

    q: (B, H, Sq, D); k, v: (B, H, Sk, D);
    mask: optional (B, Sk, 1) or (B, Sk) bool, True == masked.
    Returns (B, H, Sq, D).
    """
    B, H, Sq, D = q.shape
    Sk = k.shape[2]
    if head_depth is None:
        head_depth = D
    # '/ self.scale * math.log(400, 50)' is applied unconditionally (as in torch).
    logit_mul = math.log(400, 50) / math.sqrt(head_depth)

    # K pre-transposed once in the wrapper: (B, H, D, Sk), lane-dense on Sk.
    kt = jnp.swapaxes(k, -1, -2)

    has_mask = mask is not None
    inputs = [q, kt, v]
    if has_mask:
        if mask.shape == (B, Sk, 1):
            mask2d = mask[..., 0]
        elif mask.shape == (B, Sk):
            mask2d = mask
        else:
            raise ValueError(f"mask must be (B,{Sk},1) or (B,{Sk}); got {mask.shape}")
        bias = jnp.where(mask2d, -INF, 0.0).astype(jnp.float32).reshape(B, 1, Sk)
        inputs.append(bias)

    tq = _pick_q_block(Sq)
    grid = (B, Sq // tq)

    in_specs = [
        pl.BlockSpec((None, H, tq, D), lambda b, qi: (b, 0, qi, 0)),
        pl.BlockSpec((None, H, D, Sk), lambda b, qi: (b, 0, 0, 0)),
        pl.BlockSpec((None, H, Sk, D), lambda b, qi: (b, 0, 0, 0)),
    ]
    if has_mask:
        in_specs.append(pl.BlockSpec((None, 1, Sk), lambda b, qi: (b, 0, 0)))

    kernel = functools.partial(_attn_kernel, clip=clip, logit_mul=logit_mul,
                               has_mask=has_mask)

    out_slab = pl.pallas_call(
        kernel,
        out_shape=jax.ShapeDtypeStruct((B, Sq, H * D), q.dtype),
        grid_spec=pltpu.PrefetchScalarGridSpec(
            num_scalar_prefetch=0,
            grid=grid,
            in_specs=in_specs,
            out_specs=pl.BlockSpec((None, tq, H * D), lambda b, qi: (b, qi, 0)),
        ),
        compiler_params=pltpu.CompilerParams(
            dimension_semantics=("parallel", "parallel"),
            vmem_limit_bytes=48 * 1024 * 1024,
        ),
    )(*inputs)

    # (B, Sq, H*D) -> (B, H, Sq, D): pure layout plumbing, stays in XLA.
    return out_slab.reshape(B, Sq, H, D).transpose(0, 2, 1, 3)


# TODO(synk): return_logits=True path (returning raw masked logits) not wired up;
#             the module default is return_logits=False, which is implemented above.


if __name__ == "__main__":
    key = jax.random.PRNGKey(0)
    B, H, S, D = 2, 8, 8, 16          # H * D = 128 -> fully lane-dense output slab
    kq, kk, kv = jax.random.split(key, 3)
    Q = jax.random.normal(kq, (B, H, S, D), jnp.float32)
    K = jax.random.normal(kk, (B, H, S, D), jnp.float32)
    V = jax.random.normal(kv, (B, H, S, D), jnp.float32)

    logit_mul = math.log(400, 50) / math.sqrt(D)
    logits_ref = jnp.einsum("bhqd,bhkd->bhqk", Q, K) * logit_mul

    # --- default path: mask=None, clip=None ---
    out = jax.block_until_ready(dot_product_attention(Q, K, V))
    ref = jnp.einsum("bhqk,bhkd->bhqd", jax.nn.softmax(logits_ref, axis=-1), V)
    assert out.shape == (B, H, S, D)
    # tolerance covers the approximate (EUP) reciprocal in the kernel softmax
    assert jnp.allclose(out, ref, atol=1e-2, rtol=1e-2), "mismatch (no mask)"

    # --- masked + clipped path ---
    mask = jnp.zeros((B, S, 1), bool).at[:, -2:, :].set(True)   # last 2 nodes masked
    clip = 10.0
    out_m = jax.block_until_ready(dot_product_attention(Q, K, V, mask=mask, clip=clip))
    logits_m = clip * jnp.tanh(logits_ref)
    logits_m = jnp.where(mask[:, None, None, :, 0], -INF, logits_m)
    ref_m = jnp.einsum("bhqk,bhkd->bhqd", jax.nn.softmax(logits_m, axis=-1), V)
    assert jnp.allclose(out_m, ref_m, atol=1e-2, rtol=1e-2), "mismatch (mask+clip)"

    print("KERNEL_OK")
</pallas_src>

<mosaic_0001>
module attributes {stable_mosaic.version = 11 : i64} {
  func.func @_attn_kernel(%arg0: i32, %arg1: i32, %arg2: memref<1x8x8x16xf32, #tpu.memory_space<vmem>>, %arg3: memref<1x8x16x8xf32, #tpu.memory_space<vmem>>, %arg4: memref<1x8x8x16xf32, #tpu.memory_space<vmem>>, %arg5: memref<1x8x128xf32, #tpu.memory_space<vmem>>) attributes {dimension_semantics = [#tpu.dimension_semantics<parallel>, #tpu.dimension_semantics<parallel>], iteration_bounds = array<i64: 2, 1>, scalar_prefetch = 0 : i64, scratch_operands = 0 : i64, tpu.core_type = #tpu.core_type<tc>, window_params = [{transform_indices = @transform_0, window_bounds = array<i64: 1, 8, 8, 16>}, {transform_indices = @transform_1, window_bounds = array<i64: 1, 8, 16, 8>}, {transform_indices = @transform_2, window_bounds = array<i64: 1, 8, 8, 16>}, {transform_indices = @transform_3, window_bounds = array<i64: 1, 8, 128>}]} {
    %c0 = arith.constant 0 : index
    %c0_0 = arith.constant 0 : index
    %c0_1 = arith.constant 0 : index
    %c0_2 = arith.constant 0 : index
    %0 = vector.load %arg2[%c0, %c0_0, %c0_1, %c0_2] : memref<1x8x8x16xf32, #tpu.memory_space<vmem>>, vector<1x1x8x16xf32>
    %1 = vector.shape_cast %0 : vector<1x1x8x16xf32> to vector<8x16xf32>
    %c0_3 = arith.constant 0 : index
    %c0_4 = arith.constant 0 : index
    %c0_5 = arith.constant 0 : index
    %c0_6 = arith.constant 0 : index
    %2 = vector.load %arg3[%c0_3, %c0_4, %c0_5, %c0_6] : memref<1x8x16x8xf32, #tpu.memory_space<vmem>>, vector<1x1x16x8xf32>
    %3 = vector.shape_cast %2 : vector<1x1x16x8xf32> to vector<16x8xf32>
    %cst = arith.constant dense<0.000000e+00> : vector<8x8xf32>
    %4 = tpu.matmul %1, %3, %cst {dimension_numbers = #tpu.dot_dimension_numbers<[1], [0], [0], [1], [0, 0, 1, 1], [], []>} : vector<8x16xf32>, vector<16x8xf32>, vector<8x8xf32> -> vector<8x8xf32>
    %cst_7 = arith.constant 0.38288787 : f32
    %5 = vector.broadcast %cst_7 : f32 to vector<8x8xf32>
    %6 = arith.mulf %4, %5 : vector<8x8xf32>
    %cst_8 = arith.constant dense<0xFF800000> : vector<8xf32>
    %7 = vector.multi_reduction <maximumf>, %6, %cst_8 [1] : vector<8x8xf32> to vector<8xf32>
    %8 = vector.shape_cast %7 : vector<8xf32> to vector<8x1xf32>
    %9 = vector.broadcast %8 : vector<8x1xf32> to vector<8x8xf32>
    %10 = arith.subf %6, %9 : vector<8x8xf32>
    %11 = math.exp %10 : vector<8x8xf32>
    %cst_9 = arith.constant dense<0.000000e+00> : vector<8xf32>
    %12 = vector.multi_reduction <add>, %11, %cst_9 [1] : vector<8x8xf32> to vector<8xf32>
    %13 = vector.shape_cast %12 : vector<8xf32> to vector<8x1xf32>
    %14 = tpu.reciprocal %13 {approx = true} : vector<8x1xf32> -> vector<8x1xf32>
    %15 = vector.broadcast %14 : vector<8x1xf32> to vector<8x8xf32>
    %16 = arith.mulf %11, %15 : vector<8x8xf32>
    %c0_10 = arith.constant 0 : index
    %c0_11 = arith.constant 0 : index
    %c0_12 = arith.constant 0 : index
    %c0_13 = arith.constant 0 : index
    %17 = vector.load %arg4[%c0_10, %c0_11, %c0_12, %c0_13] : memref<1x8x8x16xf32, #tpu.memory_space<vmem>>, vector<1x1x8x16xf32>
    %18 = vector.shape_cast %17 : vector<1x1x8x16xf32> to vector<8x16xf32>
    %cst_14 = arith.constant dense<0.000000e+00> : vector<8x16xf32>
    %19 = tpu.matmul %16, %18, %cst_14 {dimension_numbers = #tpu.dot_dimension_numbers<[1], [0], [0], [1], [0, 0, 1, 1], [], []>} : vector<8x8xf32>, vector<8x16xf32>, vector<8x16xf32> -> vector<8x16xf32>
    %c0_15 = arith.constant 0 : index
    %c1 = arith.constant 1 : index
    %c0_16 = arith.constant 0 : index
    %c0_17 = arith.constant 0 : index
    %20 = vector.load %arg2[%c0_15, %c1, %c0_16, %c0_17] : memref<1x8x8x16xf32, #tpu.memory_space<vmem>>, vector<1x1x8x16xf32>
    %21 = vector.shape_cast %20 : vector<1x1x8x16xf32> to vector<8x16xf32>
    %c0_18 = arith.constant 0 : index
    %c1_19 = arith.constant 1 : index
    %c0_20 = arith.constant 0 : index
    %c0_21 = arith.constant 0 : index
    %22 = vector.load %arg3[%c0_18, %c1_19, %c0_20, %c0_21] : memref<1x8x16x8xf32, #tpu.memory_space<vmem>>, vector<1x1x16x8xf32>
    %23 = vector.shape_cast %22 : vector<1x1x16x8xf32> to vector<16x8xf32>
    %cst_22 = arith.constant dense<0.000000e+00> : vector<8x8xf32>
    %24 = tpu.matmul %21, %23, %cst_22 {dimension_numbers = #tpu.dot_dimension_numbers<[1], [0], [0], [1], [0, 0, 1, 1], [], []>} : vector<8x16xf32>, vector<16x8xf32>, vector<8x8xf32> -> vector<8x8xf32>
    %cst_23 = arith.constant 0.38288787 : f32
    %25 = vector.broadcast %cst_23 : f32 to vector<8x8xf32>
    %26 = arith.mulf %24, %25 : vector<8x8xf32>
    %cst_24 = arith.constant dense<0xFF800000> : vector<8xf32>
    %27 = vector.multi_reduction <maximumf>, %26, %cst_24 [1] : vector<8x8xf32> to vector<8xf32>
    %28 = vector.shape_cast %27 : vector<8xf32> to vector<8x1xf32>
    %29 = vector.broadcast %28 : vector<8x1xf32> to vector<8x8xf32>
    %30 = arith.subf %26, %29 : vector<8x8xf32>
    %31 = math.exp %30 : vector<8x8xf32>
    %cst_25 = arith.constant dense<0.000000e+00> : vector<8xf32>
    %32 = vector.multi_reduction <add>, %31, %cst_25 [1] : vector<8x8xf32> to vector<8xf32>
    %33 = vector.shape_cast %32 : vector<8xf32> to vector<8x1xf32>
    %34 = tpu.reciprocal %33 {approx = true} : vector<8x1xf32> -> vector<8x1xf32>
    %35 = vector.broadcast %34 : vector<8x1xf32> to vector<8x8xf32>
    %36 = arith.mulf %31, %35 : vector<8x8xf32>
    %c0_26 = arith.constant 0 : index
    %c1_27 = arith.constant 1 : index
    %c0_28 = arith.constant 0 : index
    %c0_29 = arith.constant 0 : index
    %37 = vector.load %arg4[%c0_26, %c1_27, %c0_28, %c0_29] : memref<1x8x8x16xf32, #tpu.memory_space<vmem>>, vector<1x1x8x16xf32>
    %38 = vector.shape_cast %37 : vector<1x1x8x16xf32> to vector<8x16xf32>
    %cst_30 = arith.constant dense<0.000000e+00> : vector<8x16xf32>
    %39 = tpu.matmul %36, %38, %cst_30 {dimension_numbers = #tpu.dot_dimension_numbers<[1], [0], [0], [1], [0, 0, 1, 1], [], []>} : vector<8x8xf32>, vector<8x16xf32>, vector<8x16xf32> -> vector<8x16xf32>
    %c0_31 = arith.constant 0 : index
    %c2 = arith.constant 2 : index
    %c0_32 = arith.constant 0 : index
    %c0_33 = arith.constant 0 : index
    %40 = vector.load %arg2[%c0_31, %c2, %c0_32, %c0_33] : memref<1x8x8x16xf32, #tpu.memory_space<vmem>>, vector<1x1x8x16xf32>
    %41 = vector.shape_cast %40 : vector<1x1x8x16xf32> to vector<8x16xf32>
    %c0_34 = arith.constant 0 : index
    %c2_35 = arith.constant 2 : index
    %c0_36 = arith.constant 0 : index
    %c0_37 = arith.constant 0 : index
    %42 = vector.load %arg3[%c0_34, %c2_35, %c0_36, %c0_37] : memref<1x8x16x8xf32, #tpu.memory_space<vmem>>, vector<1x1x16x8xf32>
    %43 = vector.shape_cast %42 : vector<1x1x16x8xf32> to vector<16x8xf32>
    %cst_38 = arith.constant dense<0.000000e+00> : vector<8x8xf32>
    %44 = tpu.matmul %41, %43, %cst_38 {dimension_numbers = #tpu.dot_dimension_numbers<[1], [0], [0], [1], [0, 0, 1, 1], [], []>} : vector<8x16xf32>, vector<16x8xf32>, vector<8x8xf32> -> vector<8x8xf32>
    %cst_39 = arith.constant 0.38288787 : f32
    %45 = vector.broadcast %cst_39 : f32 to vector<8x8xf32>
    %46 = arith.mulf %44, %45 : vector<8x8xf32>
    %cst_40 = arith.constant dense<0xFF800000> : vector<8xf32>
    %47 = vector.multi_reduction <maximumf>, %46, %cst_40 [1] : vector<8x8xf32> to vector<8xf32>
    %48 = vector.shape_cast %47 : vector<8xf32> to vector<8x1xf32>
    %49 = vector.broadcast %48 : vector<8x1xf32> to vector<8x8xf32>
    %50 = arith.subf %46, %49 : vector<8x8xf32>
    %51 = math.exp %50 : vector<8x8xf32>
    %cst_41 = arith.constant dense<0.000000e+00> : vector<8xf32>
    %52 = vector.multi_reduction <add>, %51, %cst_41 [1] : vector<8x8xf32> to vector<8xf32>
    %53 = vector.shape_cast %52 : vector<8xf32> to vector<8x1xf32>
    %54 = tpu.reciprocal %53 {approx = true} : vector<8x1xf32> -> vector<8x1xf32>
    %55 = vector.broadcast %54 : vector<8x1xf32> to vector<8x8xf32>
    %56 = arith.mulf %51, %55 : vector<8x8xf32>
    %c0_42 = arith.constant 0 : index
    %c2_43 = arith.constant 2 : index
    %c0_44 = arith.constant 0 : index
    %c0_45 = arith.constant 0 : index
    %57 = vector.load %arg4[%c0_42, %c2_43, %c0_44, %c0_45] : memref<1x8x8x16xf32, #tpu.memory_space<vmem>>, vector<1x1x8x16xf32>
    %58 = vector.shape_cast %57 : vector<1x1x8x16xf32> to vector<8x16xf32>
    %cst_46 = arith.constant dense<0.000000e+00> : vector<8x16xf32>
    %59 = tpu.matmul %56, %58, %cst_46 {dimension_numbers = #tpu.dot_dimension_numbers<[1], [0], [0], [1], [0, 0, 1, 1], [], []>} : vector<8x8xf32>, vector<8x16xf32>, vector<8x16xf32> -> vector<8x16xf32>
    %c0_47 = arith.constant 0 : index
    %c3 = arith.constant 3 : index
    %c0_48 = arith.constant 0 : index
    %c0_49 = arith.constant 0 : index
    %60 = vector.load %arg2[%c0_47, %c3, %c0_48, %c0_49] : memref<1x8x8x16xf32, #tpu.memory_space<vmem>>, vector<1x1x8x16xf32>
    %61 = vector.shape_cast %60 : vector<1x1x8x16xf32> to vector<8x16xf32>
    %c0_50 = arith.constant 0 : index
    %c3_51 = arith.constant 3 : index
    %c0_52 = arith.constant 0 : index
    %c0_53 = arith.constant 0 : index
    %62 = vector.load %arg3[%c0_50, %c3_51, %c0_52, %c0_53] : memref<1x8x16x8xf32, #tpu.memory_space<vmem>>, vector<1x1x16x8xf32>
    %63 = vector.shape_cast %62 : vector<1x1x16x8xf32> to vector<16x8xf32>
    %cst_54 = arith.constant dense<0.000000e+00> : vector<8x8xf32>
    %64 = tpu.matmul %61, %63, %cst_54 {dimension_numbers = #tpu.dot_dimension_numbers<[1], [0], [0], [1], [0, 0, 1, 1], [], []>} : vector<8x16xf32>, vector<16x8xf32>, vector<8x8xf32> -> vector<8x8xf32>
    %cst_55 = arith.constant 0.38288787 : f32
    %65 = vector.broadcast %cst_55 : f32 to vector<8x8xf32>
    %66 = arith.mulf %64, %65 : vector<8x8xf32>
    %cst_56 = arith.constant dense<0xFF800000> : vector<8xf32>
    %67 = vector.multi_reduction <maximumf>, %66, %cst_56 [1] : vector<8x8xf32> to vector<8xf32>
    %68 = vector.shape_cast %67 : vector<8xf32> to vector<8x1xf32>
    %69 = vector.broadcast %68 : vector<8x1xf32> to vector<8x8xf32>
    %70 = arith.subf %66, %69 : vector<8x8xf32>
    %71 = math.exp %70 : vector<8x8xf32>
    %cst_57 = arith.constant dense<0.000000e+00> : vector<8xf32>
    %72 = vector.multi_reduction <add>, %71, %cst_57 [1] : vector<8x8xf32> to vector<8xf32>
    %73 = vector.shape_cast %72 : vector<8xf32> to vector<8x1xf32>
    %74 = tpu.reciprocal %73 {approx = true} : vector<8x1xf32> -> vector<8x1xf32>
    %75 = vector.broadcast %74 : vector<8x1xf32> to vector<8x8xf32>
    %76 = arith.mulf %71, %75 : vector<8x8xf32>
    %c0_58 = arith.constant 0 : index
    %c3_59 = arith.constant 3 : index
    %c0_60 = arith.constant 0 : index
    %c0_61 = arith.constant 0 : index
    %77 = vector.load %arg4[%c0_58, %c3_59, %c0_60, %c0_61] : memref<1x8x8x16xf32, #tpu.memory_space<vmem>>, vector<1x1x8x16xf32>
    %78 = vector.shape_cast %77 : vector<1x1x8x16xf32> to vector<8x16xf32>
    %cst_62 = arith.constant dense<0.000000e+00> : vector<8x16xf32>
    %79 = tpu.matmul %76, %78, %cst_62 {dimension_numbers = #tpu.dot_dimension_numbers<[1], [0], [0], [1], [0, 0, 1, 1], [], []>} : vector<8x8xf32>, vector<8x16xf32>, vector<8x16xf32> -> vector<8x16xf32>
    %c0_63 = arith.constant 0 : index
    %c4 = arith.constant 4 : index
    %c0_64 = arith.constant 0 : index
    %c0_65 = arith.constant 0 : index
    %80 = vector.load %arg2[%c0_63, %c4, %c0_64, %c0_65] : memref<1x8x8x16xf32, #tpu.memory_space<vmem>>, vector<1x1x8x16xf32>
    %81 = vector.shape_cast %80 : vector<1x1x8x16xf32> to vector<8x16xf32>
    %c0_66 = arith.constant 0 : index
    %c4_67 = arith.constant 4 : index
    %c0_68 = arith.constant 0 : index
    %c0_69 = arith.constant 0 : index
    %82 = vector.load %arg3[%c0_66, %c4_67, %c0_68, %c0_69] : memref<1x8x16x8xf32, #tpu.memory_space<vmem>>, vector<1x1x16x8xf32>
    %83 = vector.shape_cast %82 : vector<1x1x16x8xf32> to vector<16x8xf32>
    %cst_70 = arith.constant dense<0.000000e+00> : vector<8x8xf32>
    %84 = tpu.matmul %81, %83, %cst_70 {dimension_numbers = #tpu.dot_dimension_numbers<[1], [0], [0], [1], [0, 0, 1, 1], [], []>} : vector<8x16xf32>, vector<16x8xf32>, vector<8x8xf32> -> vector<8x8xf32>
    %cst_71 = arith.constant 0.38288787 : f32
    %85 = vector.broadcast %cst_71 : f32 to vector<8x8xf32>
    %86 = arith.mulf %84, %85 : vector<8x8xf32>
    %cst_72 = arith.constant dense<0xFF800000> : vector<8xf32>
    %87 = vector.multi_reduction <maximumf>, %86, %cst_72 [1] : vector<8x8xf32> to vector<8xf32>
    %88 = vector.shape_cast %87 : vector<8xf32> to vector<8x1xf32>
    %89 = vector.broadcast %88 : vector<8x1xf32> to vector<8x8xf32>
    %90 = arith.subf %86, %89 : vector<8x8xf32>
    %91 = math.exp %90 : vector<8x8xf32>
    %cst_73 = arith.constant dense<0.000000e+00> : vector<8xf32>
    %92 = vector.multi_reduction <add>, %91, %cst_73 [1] : vector<8x8xf32> to vector<8xf32>
    %93 = vector.shape_cast %92 : vector<8xf32> to vector<8x1xf32>
    %94 = tpu.reciprocal %93 {approx = true} : vector<8x1xf32> -> vector<8x1xf32>
    %95 = vector.broadcast %94 : vector<8x1xf32> to vector<8x8xf32>
    %96 = arith.mulf %91, %95 : vector<8x8xf32>
    %c0_74 = arith.constant 0 : index
    %c4_75 = arith.constant 4 : index
    %c0_76 = arith.constant 0 : index
    %c0_77 = arith.constant 0 : index
    %97 = vector.load %arg4[%c0_74, %c4_75, %c0_76, %c0_77] : memref<1x8x8x16xf32, #tpu.memory_space<vmem>>, vector<1x1x8x16xf32>
    %98 = vector.shape_cast %97 : vector<1x1x8x16xf32> to vector<8x16xf32>
    %cst_78 = arith.constant dense<0.000000e+00> : vector<8x16xf32>
    %99 = tpu.matmul %96, %98, %cst_78 {dimension_numbers = #tpu.dot_dimension_numbers<[1], [0], [0], [1], [0, 0, 1, 1], [], []>} : vector<8x8xf32>, vector<8x16xf32>, vector<8x16xf32> -> vector<8x16xf32>
    %c0_79 = arith.constant 0 : index
    %c5 = arith.constant 5 : index
    %c0_80 = arith.constant 0 : index
    %c0_81 = arith.constant 0 : index
    %100 = vector.load %arg2[%c0_79, %c5, %c0_80, %c0_81] : memref<1x8x8x16xf32, #tpu.memory_space<vmem>>, vector<1x1x8x16xf32>
    %101 = vector.shape_cast %100 : vector<1x1x8x16xf32> to vector<8x16xf32>
    %c0_82 = arith.constant 0 : index
    %c5_83 = arith.constant 5 : index
    %c0_84 = arith.constant 0 : index
    %c0_85 = arith.constant 0 : index
    %102 = vector.load %arg3[%c0_82, %c5_83, %c0_84, %c0_85] : memref<1x8x16x8xf32, #tpu.memory_space<vmem>>, vector<1x1x16x8xf32>
    %103 = vector.shape_cast %102 : vector<1x1x16x8xf32> to vector<16x8xf32>
    %cst_86 = arith.constant dense<0.000000e+00> : vector<8x8xf32>
    %104 = tpu.matmul %101, %103, %cst_86 {dimension_numbers = #tpu.dot_dimension_numbers<[1], [0], [0], [1], [0, 0, 1, 1], [], []>} : vector<8x16xf32>, vector<16x8xf32>, vector<8x8xf32> -> vector<8x8xf32>
    %cst_87 = arith.constant 0.38288787 : f32
    %105 = vector.broadcast %cst_87 : f32 to vector<8x8xf32>
    %106 = arith.mulf %104, %105 : vector<8x8xf32>
    %cst_88 = arith.constant dense<0xFF800000> : vector<8xf32>
    %107 = vector.multi_reduction <maximumf>, %106, %cst_88 [1] : vector<8x8xf32> to vector<8xf32>
    %108 = vector.shape_cast %107 : vector<8xf32> to vector<8x1xf32>
    %109 = vector.broadcast %108 : vector<8x1xf32> to vector<8x8xf32>
    %110 = arith.subf %106, %109 : vector<8x8xf32>
    %111 = math.exp %110 : vector<8x8xf32>
    %cst_89 = arith.constant dense<0.000000e+00> : vector<8xf32>
    %112 = vector.multi_reduction <add>, %111, %cst_89 [1] : vector<8x8xf32> to vector<8xf32>
    %113 = vector.shape_cast %112 : vector<8xf32> to vector<8x1xf32>
    %114 = tpu.reciprocal %113 {approx = true} : vector<8x1xf32> -> vector<8x1xf32>
    %115 = vector.broadcast %114 : vector<8x1xf32> to vector<8x8xf32>
    %116 = arith.mulf %111, %115 : vector<8x8xf32>
    %c0_90 = arith.constant 0 : index
    %c5_91 = arith.constant 5 : index
    %c0_92 = arith.constant 0 : index
    %c0_93 = arith.constant 0 : index
    %117 = vector.load %arg4[%c0_90, %c5_91, %c0_92, %c0_93] : memref<1x8x8x16xf32, #tpu.memory_space<vmem>>, vector<1x1x8x16xf32>
    %118 = vector.shape_cast %117 : vector<1x1x8x16xf32> to vector<8x16xf32>
    %cst_94 = arith.constant dense<0.000000e+00> : vector<8x16xf32>
    %119 = tpu.matmul %116, %118, %cst_94 {dimension_numbers = #tpu.dot_dimension_numbers<[1], [0], [0], [1], [0, 0, 1, 1], [], []>} : vector<8x8xf32>, vector<8x16xf32>, vector<8x16xf32> -> vector<8x16xf32>
    %c0_95 = arith.constant 0 : index
    %c6 = arith.constant 6 : index
    %c0_96 = arith.constant 0 : index
    %c0_97 = arith.constant 0 : index
    %120 = vector.load %arg2[%c0_95, %c6, %c0_96, %c0_97] : memref<1x8x8x16xf32, #tpu.memory_space<vmem>>, vector<1x1x8x16xf32>
    %121 = vector.shape_cast %120 : vector<1x1x8x16xf32> to vector<8x16xf32>
    %c0_98 = arith.constant 0 : index
    %c6_99 = arith.constant 6 : index
    %c0_100 = arith.constant 0 : index
    %c0_101 = arith.constant 0 : index
    %122 = vector.load %arg3[%c0_98, %c6_99, %c0_100, %c0_101] : memref<1x8x16x8xf32, #tpu.memory_space<vmem>>, vector<1x1x16x8xf32>
    %123 = vector.shape_cast %122 : vector<1x1x16x8xf32> to vector<16x8xf32>
    %cst_102 = arith.constant dense<0.000000e+00> : vector<8x8xf32>
    %124 = tpu.matmul %121, %123, %cst_102 {dimension_numbers = #tpu.dot_dimension_numbers<[1], [0], [0], [1], [0, 0, 1, 1], [], []>} : vector<8x16xf32>, vector<16x8xf32>, vector<8x8xf32> -> vector<8x8xf32>
    %cst_103 = arith.constant 0.38288787 : f32
    %125 = vector.broadcast %cst_103 : f32 to vector<8x8xf32>
    %126 = arith.mulf %124, %125 : vector<8x8xf32>
    %cst_104 = arith.constant dense<0xFF800000> : vector<8xf32>
    %127 = vector.multi_reduction <maximumf>, %126, %cst_104 [1] : vector<8x8xf32> to vector<8xf32>
    %128 = vector.shape_cast %127 : vector<8xf32> to vector<8x1xf32>
    %129 = vector.broadcast %128 : vector<8x1xf32> to vector<8x8xf32>
    %130 = arith.subf %126, %129 : vector<8x8xf32>
    %131 = math.exp %130 : vector<8x8xf32>
    %cst_105 = arith.constant dense<0.000000e+00> : vector<8xf32>
    %132 = vector.multi_reduction <add>, %131, %cst_105 [1] : vector<8x8xf32> to vector<8xf32>
    %133 = vector.shape_cast %132 : vector<8xf32> to vector<8x1xf32>
    %134 = tpu.reciprocal %133 {approx = true} : vector<8x1xf32> -> vector<8x1xf32>
    %135 = vector.broadcast %134 : vector<8x1xf32> to vector<8x8xf32>
    %136 = arith.mulf %131, %135 : vector<8x8xf32>
    %c0_106 = arith.constant 0 : index
    %c6_107 = arith.constant 6 : index
    %c0_108 = arith.constant 0 : index
    %c0_109 = arith.constant 0 : index
    %137 = vector.load %arg4[%c0_106, %c6_107, %c0_108, %c0_109] : memref<1x8x8x16xf32, #tpu.memory_space<vmem>>, vector<1x1x8x16xf32>
    %138 = vector.shape_cast %137 : vector<1x1x8x16xf32> to vector<8x16xf32>
    %cst_110 = arith.constant dense<0.000000e+00> : vector<8x16xf32>
    %139 = tpu.matmul %136, %138, %cst_110 {dimension_numbers = #tpu.dot_dimension_numbers<[1], [0], [0], [1], [0, 0, 1, 1], [], []>} : vector<8x8xf32>, vector<8x16xf32>, vector<8x16xf32> -> vector<8x16xf32>
    %c0_111 = arith.constant 0 : index
    %c7 = arith.constant 7 : index
    %c0_112 = arith.constant 0 : index
    %c0_113 = arith.constant 0 : index
    %140 = vector.load %arg2[%c0_111, %c7, %c0_112, %c0_113] : memref<1x8x8x16xf32, #tpu.memory_space<vmem>>, vector<1x1x8x16xf32>
    %141 = vector.shape_cast %140 : vector<1x1x8x16xf32> to vector<8x16xf32>
    %c0_114 = arith.constant 0 : index
    %c7_115 = arith.constant 7 : index
    %c0_116 = arith.constant 0 : index
    %c0_117 = arith.constant 0 : index
    %142 = vector.load %arg3[%c0_114, %c7_115, %c0_116, %c0_117] : memref<1x8x16x8xf32, #tpu.memory_space<vmem>>, vector<1x1x16x8xf32>
    %143 = vector.shape_cast %142 : vector<1x1x16x8xf32> to vector<16x8xf32>
    %cst_118 = arith.constant dense<0.000000e+00> : vector<8x8xf32>
    %144 = tpu.matmul %141, %143, %cst_118 {dimension_numbers = #tpu.dot_dimension_numbers<[1], [0], [0], [1], [0, 0, 1, 1], [], []>} : vector<8x16xf32>, vector<16x8xf32>, vector<8x8xf32> -> vector<8x8xf32>
    %cst_119 = arith.constant 0.38288787 : f32
    %145 = vector.broadcast %cst_119 : f32 to vector<8x8xf32>
    %146 = arith.mulf %144, %145 : vector<8x8xf32>
    %cst_120 = arith.constant dense<0xFF800000> : vector<8xf32>
    %147 = vector.multi_reduction <maximumf>, %146, %cst_120 [1] : vector<8x8xf32> to vector<8xf32>
    %148 = vector.shape_cast %147 : vector<8xf32> to vector<8x1xf32>
    %149 = vector.broadcast %148 : vector<8x1xf32> to vector<8x8xf32>
    %150 = arith.subf %146, %149 : vector<8x8xf32>
    %151 = math.exp %150 : vector<8x8xf32>
    %cst_121 = arith.constant dense<0.000000e+00> : vector<8xf32>
    %152 = vector.multi_reduction <add>, %151, %cst_121 [1] : vector<8x8xf32> to vector<8xf32>
    %153 = vector.shape_cast %152 : vector<8xf32> to vector<8x1xf32>
    %154 = tpu.reciprocal %153 {approx = true} : vector<8x1xf32> -> vector<8x1xf32>
    %155 = vector.broadcast %154 : vector<8x1xf32> to vector<8x8xf32>
    %156 = arith.mulf %151, %155 : vector<8x8xf32>
    %c0_122 = arith.constant 0 : index
    %c7_123 = arith.constant 7 : index
    %c0_124 = arith.constant 0 : index
    %c0_125 = arith.constant 0 : index
    %157 = vector.load %arg4[%c0_122, %c7_123, %c0_124, %c0_125] : memref<1x8x8x16xf32, #tpu.memory_space<vmem>>, vector<1x1x8x16xf32>
    %158 = vector.shape_cast %157 : vector<1x1x8x16xf32> to vector<8x16xf32>
    %cst_126 = arith.constant dense<0.000000e+00> : vector<8x16xf32>
    %159 = tpu.matmul %156, %158, %cst_126 {dimension_numbers = #tpu.dot_dimension_numbers<[1], [0], [0], [1], [0, 0, 1, 1], [], []>} : vector<8x8xf32>, vector<8x16xf32>, vector<8x16xf32> -> vector<8x16xf32>
    %160 = tpu.concatenate %19, %39, %59, %79, %99, %119, %139, %159 in 1 : vector<8x16xf32>, vector<8x16xf32>, vector<8x16xf32>, vector<8x16xf32>, vector<8x16xf32>, vector<8x16xf32>, vector<8x16xf32>, vector<8x16xf32> -> vector<8x128xf32>
    %c0_127 = arith.constant 0 : index
    %c0_128 = arith.constant 0 : index
    %c0_129 = arith.constant 0 : index
    %161 = vector.load %arg5[%c0_127, %c0_128, %c0_129] : memref<1x8x128xf32, #tpu.memory_space<vmem>>, vector<1x8x128xf32>
    %162 = vector.shape_cast %161 : vector<1x8x128xf32> to vector<8x128xf32>
    %163 = vector.shape_cast %160 : vector<8x128xf32> to vector<1x8x128xf32>
    tpu.vector_store %arg5[%c0_127, %c0_128, %c0_129], %163 {strides = array<i32>} : memref<1x8x128xf32, #tpu.memory_space<vmem>>, vector<1x8x128xf32>,
    return
  }
  func.func @transform_0(%arg0: i32, %arg1: i32) -> (i32, i32, i32, i32) {
    %c0_i32 = arith.constant 0 : i32
    %c0_i32_0 = arith.constant 0 : i32
    %c0_i32_1 = arith.constant 0 : i32
    return %arg0, %c0_i32, %arg1, %c0_i32_0 : i32, i32, i32, i32
  }
  func.func @transform_1(%arg0: i32, %arg1: i32) -> (i32, i32, i32, i32) {
    %c0_i32 = arith.constant 0 : i32
    %c0_i32_0 = arith.constant 0 : i32
    %c0_i32_1 = arith.constant 0 : i32
    %c0_i32_2 = arith.constant 0 : i32
    return %arg0, %c0_i32, %c0_i32_0, %c0_i32_1 : i32, i32, i32, i32
  }
  func.func @transform_2(%arg0: i32, %arg1: i32) -> (i32, i32, i32, i32) {
    %c0_i32 = arith.constant 0 : i32
    %c0_i32_0 = arith.constant 0 : i32
    %c0_i32_1 = arith.constant 0 : i32
    %c0_i32_2 = arith.constant 0 : i32
    return %arg0, %c0_i32, %c0_i32_0, %c0_i32_1 : i32, i32, i32, i32
  }
  func.func @transform_3(%arg0: i32, %arg1: i32) -> (i32, i32, i32) {
    %c0_i32 = arith.constant 0 : i32
    %c0_i32_0 = arith.constant 0 : i32
    return %arg0, %arg1, %c0_i32 : i32, i32, i32
  }
}

</mosaic_0001>

<bundles_post_ra>
// kernel: tpu_custom_call.1
= control target key start
LH: loop header
LB: loop body
LE: loop exit
PB: predicated region body
PF: predicated region fallthrough
CT: control target
= control target key end

     0   :  { %8 = vsyncpa [#allocation3], 0  ;;  %s2383_s0 = inlined_call_operand.vmem [shape: f32[2,8,8,16], index: 0, kind: input, shape index: {}]   ;;  %s2384_s1 = inlined_call_operand.vmem [shape: f32[2,8,16,8], index: 1, kind: input, shape index: {}]   ;;  %s2385_s2 = inlined_call_operand.vmem [shape: f32[2,8,8,16], index: 2, kind: input, shape index: {}]   ;;  %s2386_s3 = inlined_call_operand.hbm [shape: f32[2,8,128], index: 3, kind: output, shape index: {}]  }
   0x1   :  { %10 = vsyncpa [#allocation3 + $0x1], 0  ;;  %s2139_s12 = smov 0   ;;  %s2141_s13 = smov 0  }
   0x2   :  { %s2143_s14 = smov 0   ;;  %s2145_s15 = smov 0  }
   0x3   :  { %s2147_s16 = smov 0   ;;  %s2149_s17 = smov 0  }
   0x4 LB: > { %s1708_s18 = sadd.s32 4294967295, %s2106_s17   ;;  %s1709_s19 = sadd.s32 4294967294, %s2106_s17   ;;  %s2106_s17 = sphi %s2149_s17, %s16_s17   ;;  %s2102_s16 = sphi %s2147_s16, %s2393_s16   ;;  %s2098_s15 = sphi %s2145_s15, %s2392_s15   ;;  %s2094_s14 = sphi %s2143_s14, %s2391_s14   ;;  %s2090_s13 = sphi %s2141_s13, %s2390_s13   ;;  %s2086_s12 = sphi %s2139_s12, %s2389_s12  }
   0x5   : > { %s28_s20 = sadd.s32 1, %s2102_s16  ;;  %s117_s21 = sadd.s32 1, %s2094_s14 }
   0x6   : > { %p30_p0 = scmp.ge.s32.totalorder %s28_s20, 2  ;;  %p127_p1 = scmp.ne.s32.totalorder %s2094_s14, %s2090_s13 }
   0x7   : > { %p128_p2 = scmp.eq.s32.totalorder %s1708_s18, 1  ;;  %p133_p3 = scmp.ne.s32.totalorder %s2090_s13, %s2086_s12 }
   0x8   : > { %s2395_s20 = smov (%p30_p0, %s28_s20), 0  ;;  %p134_p5 = scmp.eq.s32.totalorder %s1709_s19, 1 }
   0x9   : > { %p2179_p4 = por %p128_p2, %p127_p1  ;;  %s112_s23 = ssub.s32 %s2102_s16, %s2395_s20 }
   0xa   : > { %p1712_p6 = scmp.ge.s32.totalorder %s2106_s17, 1  ;;  %p115_p7 = scmp.eq.s32.totalorder %s112_s23, 0 }
   0xb   : > { %p2186_p8 = por %p134_p5, %p133_p3  ;;  %p179_p9 = scmp.lt.s32.totalorder %s2106_s17, 3 }
   0xc   : > { %s2192_s25 = scalar_select %p115_p7, %s2094_s14, %s117_s21  }
   0xd   : > { %p180_p10 = pnand %p1712_p6, %p179_p9 }
   0xe   : > { %p216_p11 = scmp.lt.s32.totalorder (!%p180_p10), %s2098_s15, 1  ;;  %v2108_v0 = vmov (!%p180_p10), 0.0|0.0   ;;  %vm2109_vm0 = vmmov (!%p180_p10), 0   ;;  %v2110_v1 = vmov (!%p180_p10), 0.0   ;;  %vm237_vm1 = vcmask (!%p180_p10), 130048   ;;  %s2111_s11 = smov (!%p180_p10), 16  }
   0xf   : > { %183 = sbr.rel (%p180_p10) target bundleno = 1458 (0x5b2), region = 32  ;;  %1907 = vmatprep.subr.bf16.mxu0 (!%p180_p10), %v2108_v0  ;;  %1815 = vmatprep.mubr.msk.f32.mxu0 (!%p180_p10), %vm2109_vm0, %v2110_v1  ;;  %vm312_vm2 = vcmask (!%p180_p10), 64512   ;;  %s2112_s18 = smov (!%p180_p10), 32   ;;  %vm1582_vm3 = vcmask (!%p180_p10), 261120   ;;  %vm1584_vm4 = vcmask (!%p180_p10), 392192   ;;  %vm1586_vm5 = vcmask (!%p180_p10), 523264  }
  0x10   : > { %1818 = vmatprep.subr.mxu1 (!%p180_p10), %v2110_v1  ;;  %1820 = vmatprep.mubr.msk.f32.mxu1 (!%p180_p10), %vm2109_vm0, %v2110_v1  ;;  %s2113_s19 = smov (!%p180_p10), 48   ;;  %s2114_s21 = smov (!%p180_p10), 64   ;;  %vm1588_vm6 = vcmask (!%p180_p10), 654336   ;;  %vm1590_vm7 = vcmask (!%p180_p10), 785408   ;;  %vm1592_vm8 = vcmask (!%p180_p10), 916480  }
  0x11   : > { %s2115_s23 = smov (!%p180_p10), 80   ;;  %s1765_s30 = sshll.u32 (!%p180_p10), %s2098_s15, 7 }
  0x12   : > { %s2336_s8 = scalar_lea.hbm (!%p180_p10), %s2386_s3, %s1765_s30 }
  0x16   : > { %s2199_s26 = scalar_select %p216_p11, %s2098_s15, 1 }
  0x18   : > { %s1769_s27 = sshll.u32 %s2199_s26, 7  ;;  %s1768_s28 = sshll.u32 %s2199_s26, 6 }
  0x19   : > { %s2209_s4 = scalar_lea.vmem %s2384_s1, %s1769_s27  ;;  %s2216_s7 = scalar_lea.vmem %s2383_s0, %s1768_s28 }
  0x1a   : > { %v235_v2 = vld [vmem:[%s2209_s4] sm:$0xff]  ;;  %v236_v3 = vld [vmem:[%s2209_s4 + $0x8] sm:$0xff]  ;;  %s2228_s10 = scalar_lea.vmem %s2385_s2, %s1768_s28  ;;  %v1723_v17 = vld [vmem:[%s2209_s4 + $0x10] sm:$0xff]  ;;  %s2116_s26 = smov 96  }
  0x1b   : > { %v1908_v4 = vpack.c.bf16 %v236_v3, %v235_v2  ;;  %v234_v5 = vld [vmem:[%s2216_s7] sm:$0xff]  ;;  %v1724_v18 = vld [vmem:[%s2209_s4 + $0x18] sm:$0xff]  ;;  %v1730_v23 = vld [vmem:[%s2209_s4 + $0x28] sm:$0xff]  ;;  %s2117_s27 = smov 112   ;;  %s213_s28 = sand.u32 1, %s2090_s13  }
  0x1c   : > { %v324_v15 = vld [vmem:[%s2228_s10] sm:$0xff]  ;;  %v1911_v20 = vpack.c.bf16 %v1724_v18, %v1723_v17  ;;  %v1722_v24 = vld [vmem:[%s2216_s7 + $0x8] sm:$0xff]  ;;  %v1735_v26 = vld [vmem:[%s2209_s4 + $0x30] sm:$0xff]  ;;  %s1713_s29 = sshll.u32 %s213_s28, 3  ;;  %s1596_s15 = scalar_lea.sflag [#allocation3], %s213_s28 }
  0x1d   : > { %1909 = vmatpush3.bf16.msra.mxu0 %v1908_v4  ;;  %1819 = vmatpush3.msra.mxu1 %v324_v15  ;;  %v1729_v22 = vld [vmem:[%s2209_s4 + $0x20] sm:$0xff]  ;;  %v1736_v27 = vld [vmem:[%s2209_s4 + $0x38] sm:$0xff]  ;;  %v1728_v28 = vld [vmem:[%s2216_s7 + $0x10] sm:$0xff] }
  0x1e   : > { %1830 = vmatprep.subr.mxu0 %v2110_v1  ;;  %1910 = vmatprep.subr.bf16.mxu1 %v2108_v0  ;;  %v1914_v25 = vpack.c.bf16 %v1730_v23, %v1729_v22  ;;  %v1917_v29 = vpack.c.bf16 %v1736_v27, %v1735_v26  ;;  %v1741_v30 = vld [vmem:[%s2209_s4 + $0x40] sm:$0xff]  ;;  %v1742_v31 = vld [vmem:[%s2209_s4 + $0x48] sm:$0xff]  ;;  %v1734_v32 = vld [vmem:[%s2216_s7 + $0x18] sm:$0xff] }
  0x1f   : > { %v1920_v33 = vpack.c.bf16 %v1742_v31, %v1741_v30  ;;  %v1747_v34 = vld [vmem:[%s2209_s4 + $0x50] sm:$0xff]  ;;  %v1748_v35 = vld [vmem:[%s2209_s4 + $0x58] sm:$0xff]  ;;  %v1740_v36 = vld [vmem:[%s2216_s7 + $0x20] sm:$0xff] }
  0x20   : > { %1816 = vmatmul.mubr.msk.f32.vlgmr.msra.gmra.mrb[0].mxu0 %vm237_vm1, %v234_v5  ;;  %v1923_v37 = vpack.c.bf16 %v1748_v35, %v1747_v34  ;;  %v1753_v38 = vld [vmem:[%s2209_s4 + $0x60] sm:$0xff]  ;;  %v1754_v39 = vld [vmem:[%s2209_s4 + $0x68] sm:$0xff]  ;;  %v1759_v42 = vld [vmem:[%s2209_s4 + $0x70] sm:$0xff] }
  0x21   : > { %1832 = vmatprep.mubr.msk.f32.mxu0 %vm2109_vm0, %v2110_v1  ;;  %v1746_v40 = vld [vmem:[%s2216_s7 + $0x28] sm:$0xff]  ;;  %v1926_v41 = vpack.c.bf16 %v1754_v39, %v1753_v38  ;;  %v1760_v43 = vld [vmem:[%s2209_s4 + $0x78] sm:$0xff]  ;;  %v1752_v44 = vld [vmem:[%s2216_s7 + $0x30] sm:$0xff]  ;;  %s215_s4 = scalar_lea.vmem [#allocation2], %s1713_s29 }
  0x22   : > { %v1929_v45 = vpack.c.bf16 %v1760_v43, %v1759_v42  ;;  %v1758_v46 = vld [vmem:[%s2216_s7 + $0x38] sm:$0xff]  ;;  %s1610_s5 = sshll.u32 %s215_s4, 4  ;;  %s2338_s5 = int_to_ptr.vmem [resolvable:$true] %s1610_s5 }
  0x23   : > { %s2028_s9 = scalar_lea.vmem %s2338_s5, 128 }
  0x24   : > { %p2029_p12 = scmp.ne.s32.totalorder %s2338_s5, %s2028_s9 }
  0x26   : > { %p2030_p13 = pnand %p2029_p12, %p2179_p4 }
  0x28   : > { %p2031_p0 = pneg %p2030_p13 }
  0xf3   : > { %v307_v6 = vpop.f32.mrb[0].mxu0 }
  0xf4   : > { %v311_v7 = vmul.f32 0.38288787, %v307_v6  ;;  %v1817_v8 = vpop.f32.mrb[1].mxu0 }
  0xf6   : > { %v313_v9 = vsel %vm312_vm2, %v311_v7, -inf }
  0xf7   : > { %314 = vmax.xlane.f32.xlu0 %v313_v9 }
 0x184   : > { %v315_v10 = vpop.xlane.xlu0 %314 }
 0x185   : > { %v316_v11 = vsub.f32 %v311_v7, %v315_v10 }
 0x187   : > { %v317_v12 = vmul.f32 1.442695, %v316_v11 }
 0x189   : > { %1996 = vpow2.f32 %v317_v12 }
 0x193   : > { %v1997_v13 = vpop.eup %1996 }
 0x194   : > { %v319_v14 = vsel %vm312_vm2, %v1997_v13, 0.0 }
 0x195   : > { %320 = vadd.xlane.f32.xlu0 %v319_v14 }
 0x222   : > { %v321_v16 = vpop.xlane.xlu0 %320 }
 0x223   : > { %1998 = vrcp.f32 %v321_v16 }
 0x22d   : > { %v1999_v19 = vpop.eup %1998 }
 0x22e   : > { %v323_v21 = vmul.f32 %v1999_v19, %v1997_v13 }
 0x230   : > { %1821 = vmatmul.mubr.msk.f32.vlgmr.msra.gmra.mrb[0].mxu1 %vm312_vm2, %v323_v21 }
 0x231   : > { %1912 = vmatpush3.bf16.msra.mxu1 %v1911_v20  ;;  %1827 = vmatprep.mubr.msk.f32.mxu1 %vm2109_vm0, %v2110_v1 }
 0x232   : > { %1913 = vmatprep.subr.bf16.mxu1 %v2108_v0 }
 0x234   : > { %1828 = vmatmul.mubr.msk.f32.vlgmr.msra.gmra.mrb[2].mxu1 %vm237_vm1, %v1722_v24 }
 0x235   : > { %1915 = vmatpush3.bf16.msra.mxu1 %v1914_v25  ;;  %1839 = vmatprep.mubr.msk.f32.mxu1 %vm2109_vm0, %v2110_v1 }
 0x236   : > { %1916 = vmatprep.subr.bf16.mxu1 %v2108_v0 }
 0x238   : > { %1840 = vmatmul.mubr.msk.f32.vlgmr.msra.gmra.mrb[4].mxu1 %vm237_vm1, %v1728_v28 }
 0x239   : > { %1918 = vmatpush3.bf16.msra.mxu1 %v1917_v29  ;;  %1851 = vmatprep.mubr.msk.f32.mxu1 %vm2109_vm0, %v2110_v1 }
 0x23a   : > { %1919 = vmatprep.subr.bf16.mxu1 %v2108_v0 }
 0x23c   : > { %1852 = vmatmul.mubr.msk.f32.vlgmr.msra.gmra.mrb[6].mxu1 %vm237_vm1, %v1734_v32 }
 0x23d   : > { %1921 = vmatpush3.bf16.msra.mxu1 %v1920_v33  ;;  %1863 = vmatprep.mubr.msk.f32.mxu1 %vm2109_vm0, %v2110_v1 }
 0x23e   : > { %1922 = vmatprep.subr.bf16.mxu1 %v2108_v0 }
 0x240   : > { %1864 = vmatmul.mubr.msk.f32.vlgmr.msra.gmra.mrb[8].mxu1 %vm237_vm1, %v1740_v36 }
 0x241   : > { %1924 = vmatpush3.bf16.msra.mxu1 %v1923_v37  ;;  %1875 = vmatprep.mubr.msk.f32.mxu1 %vm2109_vm0, %v2110_v1 }
 0x242   : > { %1925 = vmatprep.subr.bf16.mxu1 %v2108_v0 }
 0x244   : > { %1876 = vmatmul.mubr.msk.f32.vlgmr.msra.gmra.mrb[10].mxu1 %vm237_vm1, %v1746_v40 }
 0x245   : > { %1927 = vmatpush3.bf16.msra.mxu1 %v1926_v41  ;;  %1887 = vmatprep.mubr.msk.f32.mxu1 %vm2109_vm0, %v2110_v1 }
 0x246   : > { %1928 = vmatprep.subr.bf16.mxu1 %v2108_v0 }
 0x248   : > { %1888 = vmatmul.mubr.msk.f32.vlgmr.msra.gmra.mrb[12].mxu1 %vm237_vm1, %v1752_v44 }
 0x249   : > { %1930 = vmatpush3.bf16.msra.mxu1 %v1929_v45  ;;  %1899 = vmatprep.mubr.msk.f32.mxu1 %vm2109_vm0, %v2110_v1 }
 0x24c   : > { %1900 = vmatmul.mubr.msk.f32.vlgmr.msra.gmra.mrb[14].mxu1 %vm237_vm1, %v1758_v46 }
 0x303   : > { %v2281_v47 = vpop.f32.mrb[0].mxu1 }
 0x304   : > { %v1822_v48 = vpop.f32.mrb[1].mxu1 }
 0x307   : > { %v472_v49 = vpop.f32.mrb[2].mxu1 }
 0x308   : > { %v476_v50 = vmul.f32 0.38288787, %v472_v49  ;;  %v1829_v51 = vpop.f32.mrb[3].mxu1 }
 0x30a   : > { %v477_v52 = vsel %vm312_vm2, %v476_v50, -inf }
 0x30b   : > { %478 = vmax.xlane.f32.xlu1 %v477_v52  ;;  %v637_v53 = vpop.f32.mrb[4].mxu1 }
 0x30c   : > { %v641_v54 = vmul.f32 0.38288787, %v637_v53  ;;  %v1841_v55 = vpop.f32.mrb[5].mxu1 }
 0x30e   : > { %v642_v56 = vsel %vm312_vm2, %v641_v54, -inf }
 0x30f   : > { %643 = vmax.xlane.f32.xlu1 %v642_v56  ;;  %v802_v57 = vpop.f32.mrb[6].mxu1 }
 0x310   : > { %v806_v58 = vmul.f32 0.38288787, %v802_v57  ;;  %v1853_v59 = vpop.f32.mrb[7].mxu1  ;;  %v1732_v57 = vld [vmem:[%s2228_s10 + $0x10] sm:$0xff] }
 0x312   : > { %v807_v60 = vsel %vm312_vm2, %v806_v58, -inf }
 0x313   : > { %808 = vmax.xlane.f32.xlu0 %v807_v60  ;;  %v967_v61 = vpop.f32.mrb[8].mxu1 }
 0x314   : > { %v971_v62 = vmul.f32 0.38288787, %v967_v61  ;;  %v1865_v63 = vpop.f32.mrb[9].mxu1  ;;  %v1738_v61 = vld [vmem:[%s2228_s10 + $0x18] sm:$0xff] }
 0x316   : > { %v972_v0 = vsel %vm312_vm2, %v971_v62, -inf }
 0x317   : > { %973 = vmax.xlane.f32.xlu1 %v972_v0  ;;  %v1132_v2 = vpop.f32.mrb[10].mxu1 }
 0x318   : > { %v1136_v3 = vmul.f32 0.38288787, %v1132_v2  ;;  %v1877_v4 = vpop.f32.mrb[11].mxu1  ;;  %v1744_v2 = vld [vmem:[%s2228_s10 + $0x20] sm:$0xff] }
 0x31a   : > { %v1137_v5 = vsel %vm312_vm2, %v1136_v3, -inf }
 0x31b   : > { %1138 = vmax.xlane.f32.xlu0 %v1137_v5  ;;  %v1297_v6 = vpop.f32.mrb[12].mxu1 }
 0x31c   : > { %v1301_v7 = vmul.f32 0.38288787, %v1297_v6  ;;  %v1889_v8 = vpop.f32.mrb[13].mxu1  ;;  %v1750_v6 = vld [vmem:[%s2228_s10 + $0x28] sm:$0xff] }
 0x31e   : > { %v1302_v9 = vsel %vm312_vm2, %v1301_v7, -inf }
 0x31f   : > { %1303 = vmax.xlane.f32.xlu1 %v1302_v9  ;;  %v1462_v10 = vpop.f32.mrb[14].mxu1  ;;  %v1756_v9 = vld [vmem:[%s2228_s10 + $0x30] sm:$0xff] }
 0x320   : > { %v1466_v11 = vmul.f32 0.38288787, %v1462_v10  ;;  %v1901_v12 = vpop.f32.mrb[15].mxu1 }
 0x321   : > { %v1762_v12 = vld [vmem:[%s2228_s10 + $0x38] sm:$0xff] }
 0x322   : > { %v1467_v13 = vsel %vm312_vm2, %v1466_v11, -inf }
 0x323   : > { %1468 = vmax.xlane.f32.xlu0 %v1467_v13 }
 0x398   : > { %v479_v14 = vpop.xlane.xlu1 %478 }
 0x399   : > { %v480_v15 = vsub.f32 %v476_v50, %v479_v14  ;;  %v1726_v50 = vld [vmem:[%s2228_s10 + $0x8] sm:$0xff]  ;;  %s2118_s10 = smov [#allocation2]  }
 0x39a   : > { %1831 = vmatpush3.msra.mxu0 %v1726_v50 }
 0x39b   : > { %v481_v16 = vmul.f32 1.442695, %v480_v15  ;;  %1842 = vmatprep.subr.mxu0 %v2110_v1 }
 0x39c   : > { %v644_v17 = vpop.xlane.xlu1 %643 }
 0x39d   : > { %2000 = vpow2.f32 %v481_v16  ;;  %v645_v18 = vsub.f32 %v641_v54, %v644_v17 }
 0x39f   : > { %v646_v19 = vmul.f32 1.442695, %v645_v18 }
 0x3a0   : > { %v809_v20 = vpop.xlane.xlu0 %808 }
 0x3a1   : > { %2002 = vpow2.f32 %v646_v19  ;;  %v810_v21 = vsub.f32 %v806_v58, %v809_v20 }
 0x3a3   : > { %v811_v22 = vmul.f32 1.442695, %v810_v21 }
 0x3a4   : > { %v974_v23 = vpop.xlane.xlu1 %973 }
 0x3a5   : > { %2004 = vpow2.f32 %v811_v22  ;;  %v975_v24 = vsub.f32 %v971_v62, %v974_v23 }
 0x3a7   : > { %v2001_v25 = vpop.eup %2000  ;;  %v976_v26 = vmul.f32 1.442695, %v975_v24 }
 0x3a8   : > { %v1139_v27 = vpop.xlane.xlu0 %1138  ;;  %v483_v28 = vsel %vm312_vm2, %v2001_v25, 0.0 }
 0x3a9   : > { %2006 = vpow2.f32 %v976_v26  ;;  %v1140_v29 = vsub.f32 %v1136_v3, %v1139_v27  ;;  %484 = vadd.xlane.f32.xlu1 %v483_v28 }
 0x3ab   : > { %v2003_v30 = vpop.eup %2002  ;;  %v1141_v31 = vmul.f32 1.442695, %v1140_v29 }
 0x3ac   : > { %v1304_v32 = vpop.xlane.xlu1 %1303  ;;  %v648_v33 = vsel %vm312_vm2, %v2003_v30, 0.0 }
 0x3ad   : > { %2008 = vpow2.f32 %v1141_v31  ;;  %v1305_v34 = vsub.f32 %v1301_v7, %v1304_v32  ;;  %649 = vadd.xlane.f32.xlu0 %v648_v33 }
 0x3af   : > { %v2005_v35 = vpop.eup %2004  ;;  %v1306_v36 = vmul.f32 1.442695, %v1305_v34 }
 0x3b0   : > { %v1469_v37 = vpop.xlane.xlu0 %1468  ;;  %v813_v38 = vsel %vm312_vm2, %v2005_v35, 0.0 }
 0x3b1   : > { %2010 = vpow2.f32 %v1306_v36  ;;  %v1470_v39 = vsub.f32 %v1466_v11, %v1469_v37  ;;  %814 = vadd.xlane.f32.xlu1 %v813_v38 }
 0x3b3   : > { %v2007_v40 = vpop.eup %2006  ;;  %v1471_v41 = vmul.f32 1.442695, %v1470_v39 }
 0x3b4   : > { %v978_v42 = vsel %vm312_vm2, %v2007_v40, 0.0 }
 0x3b5   : > { %2012 = vpow2.f32 %v1471_v41  ;;  %979 = vadd.xlane.f32.xlu0 %v978_v42 }
 0x3b7   : > { %v2009_v43 = vpop.eup %2008 }
 0x3b8   : > { %v1143_v44 = vsel %vm312_vm2, %v2009_v43, 0.0 }
 0x3b9   : > { %1144 = vadd.xlane.f32.xlu1 %v1143_v44 }
 0x3bb   : > { %v2011_v45 = vpop.eup %2010 }
 0x3bc   : > { %v1308_v46 = vsel %vm312_vm2, %v2011_v45, 0.0 }
 0x3bd   : > { %1309 = vadd.xlane.f32.xlu0 %v1308_v46 }
 0x3bf   : > { %v2013_v48 = vpop.eup %2012 }
 0x3c0   : > { %v1473_v49 = vsel %vm312_vm2, %v2013_v48, 0.0 }
 0x3c1   : > { %1474 = vadd.xlane.f32.xlu1 %v1473_v49 }
 0x436   : > { %v485_v51 = vpop.xlane.xlu1 %484 }
 0x437   : > { %2014 = vrcp.f32 %v485_v51 }
 0x43a   : > { %v650_v52 = vpop.xlane.xlu0 %649 }
 0x43b   : > { %2016 = vrcp.f32 %v650_v52 }
 0x43e   : > { %v815_v53 = vpop.xlane.xlu1 %814 }
 0x43f   : > { %2018 = vrcp.f32 %v815_v53 }
 0x441   : > { %v2015_v54 = vpop.eup %2014 }
 0x442   : > { %v487_v55 = vmul.f32 %v2015_v54, %v2001_v25  ;;  %v980_v56 = vpop.xlane.xlu0 %979 }
 0x443   : > { %2020 = vrcp.f32 %v980_v56 }
 0x444   : > { %1833 = vmatmul.mubr.msk.f32.vlgmr.msra.gmra.mrb[2].mxu0 %vm312_vm2, %v487_v55 }
 0x445   : > { %v2017_v58 = vpop.eup %2016  ;;  %1843 = vmatpush3.msra.mxu0 %v1732_v57  ;;  %1844 = vmatprep.mubr.msk.f32.mxu0 %vm2109_vm0, %v2110_v1 }
 0x446   : > { %v652_v59 = vmul.f32 %v2017_v58, %v2003_v30  ;;  %v1145_v60 = vpop.xlane.xlu1 %1144  ;;  %1854 = vmatprep.subr.mxu0 %v2110_v1 }
 0x447   : > { %2022 = vrcp.f32 %v1145_v60 }
 0x448   : > { %1845 = vmatmul.mubr.msk.f32.vlgmr.msra.gmra.mrb[4].mxu0 %vm312_vm2, %v652_v59 }
 0x449   : > { %v2019_v62 = vpop.eup %2018  ;;  %1855 = vmatpush3.msra.mxu0 %v1738_v61  ;;  %1856 = vmatprep.mubr.msk.f32.mxu0 %vm2109_vm0, %v2110_v1 }
 0x44a   : > { %v817_v63 = vmul.f32 %v2019_v62, %v2005_v35  ;;  %v1310_v0 = vpop.xlane.xlu0 %1309  ;;  %1866 = vmatprep.subr.mxu0 %v2110_v1 }
 0x44b   : > { %2024 = vrcp.f32 %v1310_v0 }
 0x44c   : > { %1857 = vmatmul.mubr.msk.f32.vlgmr.msra.gmra.mrb[6].mxu0 %vm312_vm2, %v817_v63 }
 0x44d   : > { %v2021_v3 = vpop.eup %2020  ;;  %1867 = vmatpush3.msra.mxu0 %v1744_v2  ;;  %1868 = vmatprep.mubr.msk.f32.mxu0 %vm2109_vm0, %v2110_v1 }
 0x44e   : > { %v982_v4 = vmul.f32 %v2021_v3, %v2007_v40  ;;  %v1475_v5 = vpop.xlane.xlu1 %1474  ;;  %1878 = vmatprep.subr.mxu0 %v2110_v1 }
 0x44f   : > { %2026 = vrcp.f32 %v1475_v5 }
 0x450   : > { %1869 = vmatmul.mubr.msk.f32.vlgmr.msra.gmra.mrb[8].mxu0 %vm312_vm2, %v982_v4 }
 0x451   : > { %v2023_v7 = vpop.eup %2022  ;;  %1879 = vmatpush3.msra.mxu0 %v1750_v6  ;;  %1880 = vmatprep.mubr.msk.f32.mxu0 %vm2109_vm0, %v2110_v1 }
 0x452   : > { %v1147_v8 = vmul.f32 %v2023_v7, %v2009_v43  ;;  %1890 = vmatprep.subr.mxu0 %v2110_v1 }
 0x454   : > { %1881 = vmatmul.mubr.msk.f32.vlgmr.msra.gmra.mrb[10].mxu0 %vm312_vm2, %v1147_v8 }
 0x455   : > { %v2025_v10 = vpop.eup %2024  ;;  %1891 = vmatpush3.msra.mxu0 %v1756_v9  ;;  %1892 = vmatprep.mubr.msk.f32.mxu0 %vm2109_vm0, %v2110_v1 }
 0x456   : > { %v1312_v11 = vmul.f32 %v2025_v10, %v2011_v45  ;;  %1902 = vmatprep.subr.mxu0 %v2110_v1 }
 0x458   : > { %1893 = vmatmul.mubr.msk.f32.vlgmr.msra.gmra.mrb[12].mxu0 %vm312_vm2, %v1312_v11 }
 0x459   : > { %v2027_v13 = vpop.eup %2026  ;;  %1903 = vmatpush3.msra.mxu0 %v1762_v12  ;;  %1904 = vmatprep.mubr.msk.f32.mxu0 %vm2109_vm0, %v2110_v1 }
 0x45a   : > { %v1477_v14 = vmul.f32 %v2027_v13, %v2013_v48 }
 0x45c   : > { %1905 = vmatmul.mubr.msk.f32.vlgmr.msra.gmra.mrb[14].mxu0 %vm312_vm2, %v1477_v14 }
 0x517   : > { %v559_v15 = vpop.f32.mrb[2].mxu0 }
 0x518   : > { %1554 = vrot.lane.b32.xlu0 %v559_v15, %s2111_s11  ;;  %v1834_v16 = vpop.f32.mrb[3].mxu0  ;;  %s2032_s11 = sshll.u32 %s2118_s10, 4  ;;  %s2033_s11 = int_to_ptr.vmem [resolvable:$false] %s2032_s11 }
 0x519   : > { %p2035_p1 = scmp.lt.s32.totalorder %s2338_s5, %s2033_s11 }
 0x51b   : > { %v724_v17 = vpop.f32.mrb[4].mxu0 }
 0x51c   : > { %1558 = vrot.lane.b32.xlu1 %v724_v17, %s2112_s18  ;;  %v1846_v18 = vpop.f32.mrb[5].mxu0  ;;  %s2034_s18 = scalar_lea.vmem %s2033_s11, 256 }
 0x51d   : > { %p2036_p2 = scmp.lt.s32.totalorder %s2034_s18, %s2028_s9 }
 0x51f   : > { %v889_v19 = vpop.f32.mrb[6].mxu0  ;;  %p2037_p3 = por %p2036_p2, %p2035_p1 }
 0x520   : > { %1562 = vrot.lane.b32.xlu1 %v889_v19, %s2113_s19  ;;  %v1858_v20 = vpop.f32.mrb[7].mxu0 }
 0x521   : > { %p2038_p5 = pnand %p2037_p3, %p2031_p0 }
 0x523   : > { %v1054_v21 = vpop.f32.mrb[8].mxu0 }
 0x524   : > { %1566 = vrot.lane.b32.xlu1 %v1054_v21, %s2114_s21  ;;  %v1870_v1 = vpop.f32.mrb[9].mxu0 }
 0x527   : > { %v1219_v22 = vpop.f32.mrb[10].mxu0 }
 0x528   : > { %1570 = vrot.lane.b32.xlu0 %v1219_v22, %s2115_s23  ;;  %v1882_v23 = vpop.f32.mrb[11].mxu0 }
 0x52b   : > { %v1384_v24 = vpop.f32.mrb[12].mxu0 }
 0x52c   : > { %1574 = vrot.lane.b32.xlu1 %v1384_v24, %s2116_s26  ;;  %v1894_v25 = vpop.f32.mrb[13].mxu0 }
 0x52f   : > { %v1549_v26 = vpop.f32.mrb[14].mxu0 }
 0x530   : > { %1578 = vrot.lane.b32.xlu0 %v1549_v26, %s2117_s27  ;;  %v1906_v27 = vpop.f32.mrb[15].mxu0 }
 0x58a   : > { %v1555_v30 = vpop.permute.xlu0 %1554 }
 0x58b   : > { %v1581_v32 = vsel %vm237_vm1, %v2281_v47, %v1555_v30 }
 0x58e   : > { %v1559_v28 = vpop.permute.xlu1 %1558 }
 0x58f   : > { %v1583_v33 = vsel %vm1582_vm3, %v1581_v32, %v1559_v28 }
 0x592   : > { %v1563_v29 = vpop.permute.xlu1 %1562 }
 0x593   : > { %v1585_v35 = vsel %vm1584_vm4, %v1583_v33, %v1563_v29 }
 0x596   : > { %v1567_v31 = vpop.permute.xlu1 %1566 }
 0x597   : > { %v1587_v37 = vsel %vm1586_vm5, %v1585_v35, %v1567_v31 }
 0x59a   : > { %v1571_v34 = vpop.permute.xlu0 %1570 }
 0x59b   : > { %v1589_v38 = vsel %vm1588_vm6, %v1587_v37, %v1571_v34 }
 0x59e   : > { %v1575_v36 = vpop.permute.xlu1 %1574 }
 0x59f   : > { %v1591_v39 = vsel %vm1590_vm7, %v1589_v38, %v1575_v36 }
 0x5a2   : > { %v1579_v40 = vpop.permute.xlu0 %1578 }
 0x5a3   : > { %v1593_v47 = vsel %vm1592_vm8, %v1591_v39, %v1579_v40 }
 0x5a4   : > { %1594 = vst [vmem:[%s215_s4] sm:$0xff] %v1593_v47 }
 0x5a5   : > { %2041 = shalt.err (!%p2038_p5)
}
 0x5a6   : > { %s2042_s19 = scalar_lea.hbm %s2336_s8, 128  ;;  %s2046_s26 = scalar_lea.hbm %s2386_s3, 256 }
 0x5a7   : > { %p2043_p6 = scmp.ne.s32.totalorder %s2336_s8, %s2042_s19  ;;  %p2047_p10 = scmp.lt.u32.totalorder %s2336_s8, %s2386_s3 }
 0x5a8   : > { %p2048_p11 = scmp.lt.u32.totalorder %s2046_s26, %s2042_s19  ;;  %p2050_p13 = scmp.lt.u32.totalorder %s2042_s19, %s2336_s8 }
 0x5a9   : > { %p2044_p7 = pnand %p2043_p6, %p2179_p4 }
 0x5aa   : > { %p2049_p12 = por %p2048_p11, %p2047_p10 }
 0x5ab   : > { %p2045_p9 = pneg %p2044_p7 }
 0x5ac   : > { %p2051_p0 = por %p2050_p13, %p2049_p12 }
 0x5ae   : > { %p2052_p1 = pnand %p2051_p0, %p2045_p9 }
 0x5b0   : > { %2055 = shalt.err (!%p2052_p1)
}
 0x5b1   : > { %1931 = dma.vmem_to_hbm [thread:$0]  (%p2179_p4), %s2338_s5, 128, %s2336_s8, %s1596_s15  }
 0x5b2 PF: > { %p1937_p2 = scmp.ge.s32.totalorder %s2106_s17, 2  ;;  %s1622_s29 = sand.u32 1, %s2086_s12  }
 0x5b3   : > { %s1623_s30 = scalar_lea.sflag [#allocation3], %s1622_s29 }
 0x5b4   : > { %p1934_p3 = pnand %p1937_p2, %p2186_p8 }
 0x5b6   : > { %2081 = dma.done.wait (!%p1934_p3), %s1623_s30, 128  }
 0x5b7   : > { %2083 = vsyncadd (!%p1934_p3), %s1623_s30, 4294967168  ;;  %s16_s17 = sadd.s32 1, %s2106_s17   ;;  %s2389_s12 = smov %s2090_s13 }
 0x5b8   : > { %p13_p5 = scmp.ge.s32.totalorder %s16_s17, 4   ;;  %s2390_s13 = smov %s2094_s14 }
 0x5b9   : > { %s2391_s14 = smov %s2192_s25  ;;  %s2392_s15 = smov %s2102_s16 }
 0x5ba   : > { %s2393_s16 = smov %s2395_s20  ;;  %15 = sbr.rel (!%p13_p5) target bundleno = 4 (0x4), region = 94 }
 0x5c1   :  { %1628 = vsyncpa [#allocation3], 1 }
 0x5c2   :  { %1630 = vsyncpa [#allocation3 + $0x1], 1 }

</bundles_post_ra>
